<compile_context>
chip_gen: v5e
topology: v5e:2x2
jax: 0.10.0
libtpu: 0.0.40
codegen_flags: <defaults>
</compile_context>

<pallas_src>
import functools

import jax
import jax.numpy as jnp
from jax.experimental import pallas as pl
from jax.experimental.pallas import tpu as pltpu


def _metric_kernel(score_ref, counts_ref, *, batch_size, block_rows, n6, n10):
    """Partial top-1/6/10 counts for one batch block.

    score_ref : VMEM ref, (block_rows, N), caller's dtype (no upcast).
    counts_ref: SMEM ref, (1, 3) int32 — this block's partial counts.
    """
    s = score_ref[...]                                   # (TB, N)
    tb = s.shape[0]

    # Prefix-max formulation of "argmax <= k-1":
    #   argmax(row) <= k-1  <=>  max(row[:k]) == max(row)
    # First-occurrence tie semantics are preserved (matches torch.max / argmax).
    row_max = jnp.max(s, axis=1, keepdims=True)                        # (TB, 1)
    top1_hit = s[:, 0:1] == row_max
    top6_hit = jnp.max(s[:, :n6], axis=1, keepdims=True) == row_max
    top10_hit = jnp.max(s[:, :n10], axis=1, keepdims=True) == row_max

    # Mask padded tail rows of the last (ragged) block.
    row_idx = (pl.program_id(0) * block_rows
               + jax.lax.broadcasted_iota(jnp.int32, (tb, 1), dimension=0))
    valid = row_idx < batch_size

    counts_ref[0, 0] = jnp.sum((top1_hit & valid).astype(jnp.int32))
    counts_ref[0, 1] = jnp.sum((top6_hit & valid).astype(jnp.int32))
    counts_ref[0, 2] = jnp.sum((top10_hit & valid).astype(jnp.int32))
    # NOTE: a row containing NaN counts as a miss for all top-k (torch.argmax
    # would return the NaN position) — acceptable divergence for a metric.


def _choose_block_rows(batch, n, itemsize, target_block_bytes=4 << 20):
    """Largest batch tile (multiple of 8) with a ~<=4 MiB block."""
    tb = max(8, target_block_bytes // max(1, n * itemsize))
    tb = max(8, (tb // 8) * 8)
    if tb >= batch:
        return batch            # single full-extent block (always layout-legal)
    return tb


def validation_metric_counts(score, block_rows=None):
    """Returns int32 [top1_correct, top6_correct, top10_correct] for (B, N)."""
    B, N = score.shape
    itemsize = jnp.dtype(score.dtype).itemsize
    tb = block_rows if block_rows is not None else _choose_block_rows(B, N, itemsize)
    tb = min(int(tb), B)
    if tb < B:
        tb = max(8, (tb // 8) * 8)          # sublane-aligned unless full-extent
    num_blocks = pl.cdiv(B, tb)

    kernel = functools.partial(
        _metric_kernel,
        batch_size=B, block_rows=tb, n6=min(6, N), n10=min(10, N))

    # 2 pipeline buffers for the input block + 1 MiB slack; set explicitly so
    # the same code stays inside v7x's smaller scoped-VMEM default.
    vmem_limit = int(min(2 * tb * N * itemsize + (1 << 20), 64 << 20))

    partials = pl.pallas_call(
        kernel,
        out_shape=jax.ShapeDtypeStruct((num_blocks, 3), jnp.int32),
        grid=(num_blocks,),
        in_specs=[pl.BlockSpec((tb, N), lambda i: (i, 0))],
        out_specs=pl.BlockSpec((1, 3), lambda i: (i, 0),
                               memory_space=pltpu.SMEM),
        compiler_params=pltpu.CompilerParams(
            dimension_semantics=("parallel",),     # v7x: shard blocks over 2 TCs
            vmem_limit_bytes=vmem_limit),
    )(score)

    return jnp.sum(partials, axis=0)               # (3,) int32, stays on device


class ValidationMetric:
    """Stateful JAX-side counterpart of the PyTorch module (numeric part).

    Counts accumulate on-device; the host round-trip only happens in
    get_results().
    """

    def __init__(self):
        self._counts = jnp.zeros((3,), dtype=jnp.int32)
        self.index = 0

    def __call__(self, score):
        self._counts = self._counts + validation_metric_counts(score)
        self.index += int(score.shape[0])
        # TODO(synk): per-example ROUGE accumulation (string ops) stays host-side.

    def get_results(self, reset=True):
        counts = jax.device_get(self._counts)
        res = {
            "top1_accuracy": int(counts[0]) / self.index,
            "top6_accuracy": int(counts[1]) / self.index,
            "top10_accuracy": int(counts[2]) / self.index,
        }
        if reset:
            self._counts = jnp.zeros((3,), dtype=jnp.int32)
            self.index = 0
        return res


def _reference_counts(score):
    idx = jnp.argmax(score, axis=1)
    return jnp.array(
        [jnp.sum(idx == 0), jnp.sum(idx <= 5), jnp.sum(idx <= 9)],
        dtype=jnp.int32,
    )


if __name__ == "__main__":
    key = jax.random.PRNGKey(0)
    B, N = 8, 16  # batch of 8 examples, 16 candidate scores each
    score_f32 = jax.random.normal(key, (B, N), dtype=jnp.float32)

    # Single-block path, both f32 and bf16 (no wrapper upcast).
    for score in (score_f32, score_f32.astype(jnp.bfloat16)):
        counts = jax.block_until_ready(validation_metric_counts(score))
        ref = _reference_counts(score)
        assert jnp.array_equal(counts, ref), (score.dtype, counts, ref)

    # Multi-block grid with a ragged tail block (masking path).
    score_big = jax.random.normal(jax.random.PRNGKey(1), (37, 16), jnp.float32)
    counts_big = jax.block_until_ready(
        validation_metric_counts(score_big, block_rows=16))
    ref_big = _reference_counts(score_big)
    assert jnp.array_equal(counts_big, ref_big), (counts_big, ref_big)

    # Exercise the stateful wrapper (device-resident accumulation).
    metric = ValidationMetric()
    metric(score_f32)
    metric(score_big)
    res = metric.get_results()
    total = B + score_big.shape[0]
    exp = (_reference_counts(score_f32) + ref_big).astype(jnp.float32) / total
    assert abs(res["top1_accuracy"] - float(exp[0])) < 1e-6
    assert abs(res["top6_accuracy"] - float(exp[1])) < 1e-6
    assert abs(res["top10_accuracy"] - float(exp[2])) < 1e-6

    print("KERNEL_OK")
</pallas_src>

<mosaic_0001>
module attributes {stable_mosaic.version = 11 : i64} {
  func.func @_metric_kernel(%arg0: i32, %arg1: memref<8x16xf32, #tpu.memory_space<vmem>>, %arg2: memref<1x3xi32, #tpu.memory_space<smem>>) attributes {dimension_semantics = [#tpu.dimension_semantics<parallel>], iteration_bounds = array<i64: 1>, scalar_prefetch = 0 : i64, scratch_operands = 0 : i64, tpu.core_type = #tpu.core_type<tc>, window_params = [{transform_indices = @transform_0, window_bounds = array<i64: 8, 16>}, {transform_indices = @transform_1, window_bounds = array<i64: 1, 3>}]} {
    %c0 = arith.constant 0 : index
    %c0_0 = arith.constant 0 : index
    %0 = vector.load %arg1[%c0, %c0_0] : memref<8x16xf32, #tpu.memory_space<vmem>>, vector<8x16xf32>
    %cst = arith.constant dense<0xFF800000> : vector<8xf32>
    %1 = vector.multi_reduction <maximumf>, %0, %cst [1] : vector<8x16xf32> to vector<8xf32>
    %2 = vector.shape_cast %1 : vector<8xf32> to vector<8x1xf32>
    %3 = vector.extract_strided_slice %0 {offsets = [0, 0], sizes = [8, 1], strides = [1, 1]} : vector<8x16xf32> to vector<8x1xf32>
    %4 = arith.cmpf oeq, %3, %2 : vector<8x1xf32>
    %5 = vector.extract_strided_slice %0 {offsets = [0, 0], sizes = [8, 6], strides = [1, 1]} : vector<8x16xf32> to vector<8x6xf32>
    %cst_1 = arith.constant dense<0xFF800000> : vector<8xf32>
    %6 = vector.multi_reduction <maximumf>, %5, %cst_1 [1] : vector<8x6xf32> to vector<8xf32>
    %7 = vector.shape_cast %6 : vector<8xf32> to vector<8x1xf32>
    %8 = arith.cmpf oeq, %7, %2 : vector<8x1xf32>
    %9 = vector.extract_strided_slice %0 {offsets = [0, 0], sizes = [8, 10], strides = [1, 1]} : vector<8x16xf32> to vector<8x10xf32>
    %cst_2 = arith.constant dense<0xFF800000> : vector<8xf32>
    %10 = vector.multi_reduction <maximumf>, %9, %cst_2 [1] : vector<8x10xf32> to vector<8xf32>
    %11 = vector.shape_cast %10 : vector<8xf32> to vector<8x1xf32>
    %12 = arith.cmpf oeq, %11, %2 : vector<8x1xf32>
    %c8_i32 = arith.constant 8 : i32
    %13 = arith.muli %arg0, %c8_i32 : i32
    %14 = tpu.iota {dimensions = array<i32: 0>} : vector<8x1xi32>
    %15 = vector.broadcast %13 : i32 to vector<8x1xi32>
    %16 = arith.addi %15, %14 : vector<8x1xi32>
    %c8_i32_3 = arith.constant 8 : i32
    %17 = vector.broadcast %c8_i32_3 : i32 to vector<8x1xi32>
    %18 = arith.cmpi slt, %16, %17 : vector<8x1xi32>
    %19 = arith.andi %4, %18 : vector<8x1xi1>
    %20 = arith.extui %19 : vector<8x1xi1> to vector<8x1xi32>
    %21 = vector.shape_cast %20 : vector<8x1xi32> to vector<1x8x1xi32>
    %cst_4 = arith.constant dense<0> : vector<1xi32>
    %22 = vector.multi_reduction <add>, %21, %cst_4 [1, 2] : vector<1x8x1xi32> to vector<1xi32>
    %23 = vector.shape_cast %22 : vector<1xi32> to vector<1x1x1xi32>
    %24 = vector.extract %23[0, 0, 0] : i32 from vector<1x1x1xi32>
    %c0_5 = arith.constant 0 : index
    %c0_6 = arith.constant 0 : index
    %25 = memref.load %arg2[%c0_5, %c0_6] : memref<1x3xi32, #tpu.memory_space<smem>>
    memref.store %24, %arg2[%c0_5, %c0_6] : memref<1x3xi32, #tpu.memory_space<smem>>
    %26 = arith.andi %8, %18 : vector<8x1xi1>
    %27 = arith.extui %26 : vector<8x1xi1> to vector<8x1xi32>
    %28 = vector.shape_cast %27 : vector<8x1xi32> to vector<1x8x1xi32>
    %cst_7 = arith.constant dense<0> : vector<1xi32>
    %29 = vector.multi_reduction <add>, %28, %cst_7 [1, 2] : vector<1x8x1xi32> to vector<1xi32>
    %30 = vector.shape_cast %29 : vector<1xi32> to vector<1x1x1xi32>
    %31 = vector.extract %30[0, 0, 0] : i32 from vector<1x1x1xi32>
    %c0_8 = arith.constant 0 : index
    %c1 = arith.constant 1 : index
    %32 = memref.load %arg2[%c0_8, %c1] : memref<1x3xi32, #tpu.memory_space<smem>>
    memref.store %31, %arg2[%c0_8, %c1] : memref<1x3xi32, #tpu.memory_space<smem>>
    %33 = arith.andi %12, %18 : vector<8x1xi1>
    %34 = arith.extui %33 : vector<8x1xi1> to vector<8x1xi32>
    %35 = vector.shape_cast %34 : vector<8x1xi32> to vector<1x8x1xi32>
    %cst_9 = arith.constant dense<0> : vector<1xi32>
    %36 = vector.multi_reduction <add>, %35, %cst_9 [1, 2] : vector<1x8x1xi32> to vector<1xi32>
    %37 = vector.shape_cast %36 : vector<1xi32> to vector<1x1x1xi32>
    %38 = vector.extract %37[0, 0, 0] : i32 from vector<1x1x1xi32>
    %c0_10 = arith.constant 0 : index
    %c2 = arith.constant 2 : index
    %39 = memref.load %arg2[%c0_10, %c2] : memref<1x3xi32, #tpu.memory_space<smem>>
    memref.store %38, %arg2[%c0_10, %c2] : memref<1x3xi32, #tpu.memory_space<smem>>
    return
  }
  func.func @transform_0(%arg0: i32) -> (i32, i32) {
    %c0_i32 = arith.constant 0 : i32
    %c0_i32_0 = arith.constant 0 : i32
    return %arg0, %c0_i32 : i32, i32
  }
  func.func @transform_1(%arg0: i32) -> (i32, i32) {
    %c0_i32 = arith.constant 0 : i32
    %c0_i32_0 = arith.constant 0 : i32
    return %arg0, %c0_i32 : i32, i32
  }
}

</mosaic_0001>

<bundles_post_ra>
// kernel: tpu_custom_call.1
= control target key start
LH: loop header
LB: loop body
LE: loop exit
PB: predicated region body
PF: predicated region fallthrough
CT: control target
= control target key end

     0   :  { %6 = vsyncpa [#allocation3], 0  ;;  %s176_s0 = inlined_call_operand.hbm [shape: f32[8,16], index: 0, kind: input, shape index: {}]   ;;  %s177_s1 = inlined_call_operand.hbm [shape: s32[1,3], index: 1, kind: output, shape index: {}]  }
   0x1   :  { %7 = vsyncpa [#allocation4], 0  ;;  %s13_s8 = sshll.u32 %s176_s0, 4  ;;  %s157_s9 = smov [#allocation2]   ;;  %s14_s8 = int_to_ptr.hbm [resolvable:$true] %s13_s8 }
   0x2   :  { %s15_s10 = sshll.u32 %s157_s9, 4  ;;  %s16_s10 = int_to_ptr.vmem [resolvable:$true] %s15_s10 }
   0x3   :  { %18 = dma.hbm_to_vmem [thread:$0]  %s14_s8, 128, %s16_s10, [#allocation3]  }
   0x4   :  { %153 = dma.done.wait [#allocation3], 128  }
   0x5   :  { %154 = vsyncadd [#allocation3], 4294967168  ;;  %vm34_vm0 = vcmask 80896   ;;  %vm24_vm1 = vcmask 130048   ;;  %v23_v0 = vld [vmem:[#allocation2] sm:$0xff]  ;;  %vm47_vm2 = vcmask 7168  }
   0x6   :  { %v35_v1 = vsel %vm34_vm0, %v23_v0, -inf  ;;  %v25_v2 = vsel %vm24_vm1, %v23_v0, -inf  ;;  %v158_v4 = vmov 0   ;;  %vm29_vm4 = vcmask 48128   ;;  %s97_s13 = sshll.u32 %s177_s1, 4  ;;  %s159_s16 = smov [#allocation5]   ;;  %s98_s13 = int_to_ptr.hbm [resolvable:$true] %s97_s13 }
   0x7   :  { %36 = vmax.xlane.f32.xlu2 %v35_v1  ;;  %26 = vmax.xlane.f32.xlu0 %v25_v2  ;;  %v30_v11 = vsel %vm29_vm4, %v23_v0, -inf }
  0x7a   :  { %v27_v3 = vpop.xlane.xlu0 %26  ;;  %v37_v12 = vpop.xlane.xlu2 %36 }
  0x7b   :  { %vm28_vm3 = vcmp.eq.f32.partialorder %v23_v0, %v27_v3  ;;  %vm38_vm5 = vcmp.eq.f32.partialorder %v37_v12, %v27_v3 }
  0x7c   :  { %v46_v5 = vsel %vm28_vm3, 1, %v158_v4  ;;  %v82_v13 = vsel %vm38_vm5, 1, %v158_v4 }
  0x7d   :  { %v48_v6 = vsel %vm47_vm2, %v46_v5, 0  ;;  %v83_v17 = vrot.slane %v82_v13, 4 }
  0x7e   :  { %v50_v7 = vshrl.u32 %v48_v6, 16  ;;  %v49_v8 = vand.u32 65535, %v48_v6 }
  0x7f   :  { %v84_v21 = vadd.s32 %v83_v17, %v82_v13 }
  0x80   :  { %v52_v9 = vcvt.s32.f32 %v50_v7  ;;  %v51_v10 = vcvt.s32.f32 %v49_v8 }
  0x81   :  { %v85_v26 = vrot.slane %v84_v21, 2 }
  0x82   :  { %55 = vadd.xlane.f32.xlu0 %v52_v9  ;;  %53 = vadd.xlane.f32.xlu1 %v51_v10 }
  0x83   :  { %v86_v31 = vadd.s32 %v85_v26, %v84_v21 }
  0x85   :  { %v87_v36 = vrot.slane %v86_v31, 1 }
  0x87   :  { %v88_v39 = vadd.s32 %v87_v36, %v86_v31 }
  0x8a   :  { %31 = vmax.xlane.f32.xlu1 %v30_v11 }
  0xf5   :  { %v56_v14 = vpop.xlane.xlu0 %55  ;;  %v54_v15 = vpop.xlane.xlu1 %53 }
  0xf6   :  { %v58_v16 = vcvt.f32.s32 %v56_v14  ;;  %v57_v19 = vcvt.f32.s32 %v54_v15 }
  0xf8   :  { %v59_v18 = vshll.u32 %v58_v16, 16 }
  0xfa   :  { %v60_v20 = vadd.s32 %v59_v18, %v57_v19 }
  0xfc   :  { %v61_v22 = vrot.slane %v60_v20, 4 }
  0xfd   :  { %v32_v23 = vpop.xlane.xlu1 %31 }
  0xfe   :  { %vm33_vm6 = vcmp.eq.f32.partialorder %v32_v23, %v27_v3  ;;  %v62_v24 = vadd.s32 %v61_v22, %v60_v20 }
  0xff   :  { %v71_v25 = vsel %vm33_vm6, 1, %v158_v4 }
 0x100   :  { %v72_v27 = vrot.slane %v71_v25, 4  ;;  %v63_v28 = vrot.slane %v62_v24, 2 }
 0x102   :  { %v73_v29 = vadd.s32 %v72_v27, %v71_v25  ;;  %v64_v30 = vadd.s32 %v63_v28, %v62_v24 }
 0x104   :  { %v74_v32 = vrot.slane %v73_v29, 2  ;;  %v65_v33 = vrot.slane %v64_v30, 1 }
 0x106   :  { %v66_v34 = vadd.s32 %v65_v33, %v64_v30  ;;  %v75_v35 = vadd.s32 %v74_v32, %v73_v29 }
 0x108   :  { %108 = vpush %v66_v34  ;;  %v76_v37 = vrot.slane %v75_v35, 1 }
 0x10a   :  { %v77_v38 = vadd.s32 %v76_v37, %v75_v35 }
 0x10c   :  { %110 = vpush %v77_v38 }
 0x10d   :  { %112 = vpush %v88_v39 }
 0x139   :  { %s109_s0 = spop %108 }
 0x13a   :  { %69 = sst [smem:[#allocation5]] %s109_s0 }
 0x13d   :  { %s111_s14 = spop %110 }
 0x13e   :  { %80 = sst [smem:[#allocation5 + $0x1]] %s111_s14  ;;  %s113_s15 = spop %112 }
 0x13f   :  { %91 = sst [smem:[#allocation5 + $0x2]] %s113_s15 }
 0x140   :  { %100 = dma.smem_to_hbm %s159_s16, 16, %s98_s13, [#allocation4]  }
 0x141   :  { %155 = dma.done.wait [#allocation4], 16  }
 0x142   :  { %156 = vsyncadd [#allocation4], 4294967280 }
 0x143   :  { %105 = sfence }
 0x144   :  { %106 = vsyncpa [#allocation3], 1 }
 0x145   :  { %107 = vsyncpa [#allocation4], 1 }

</bundles_post_ra>
